<compile_context>
chip_gen: v7x
topology: tpu7x:2x2x1
jax: 0.10.0
libtpu: 0.0.40
codegen_flags: <defaults>
</compile_context>

<pallas_src>
import jax
import jax.numpy as jnp
from jax.experimental import pallas as pl
from jax.experimental.pallas import tpu as pltpu

# rows of u_dus used by the Poisson residual
_ROW_U, _ROW_D2X, _ROW_D2Y = 0, 3, 5

_BUFS = 8                     # (3 inputs + 1 output) x double-buffering
_MIN_STEPS = 8                # >= 4 grid steps per TensorCore on a 2-TC chip
_DEFAULT_BUDGET = 6 * 1024 * 1024   # per-step VMEM working-set target (bytes)
_BYPASS_BYTES = 2 * 1024 * 1024     # below this HBM traffic, let XLA fuse it


def _poisson_kernel(u_ref, d2x_ref, d2y_ref, o_ref):
    # (tb, tn) tiles; purely element-wise (VPU), HBM-bandwidth bound.
    # NOTE: the 0*dudx + 0*dudy terms of the reference are algebraically dead,
    # so those rows are never DMA'd.  This only differs from the torch module
    # if dudx/dudy contain NaN/Inf (they would no longer propagate).
    o_ref[...] = d2y_ref[...] + d2x_ref[...] - 5.0 * u_ref[...] + 5.0


def _sublane_pack_factor(B, N, itemsize):
    """Fold lane factors into the sublane (batch) axis when B is smaller than
    the per-vreg sublane count, so tiles are sublane-dense and stores unmasked.
    Returns k such that (B, N) is viewed as (B*k, N//k)."""
    sub = {4: 8, 2: 16, 1: 32}.get(itemsize, 8)
    k = 1
    while B * (k * 2) <= sub and N % (k * 2) == 0:
        k *= 2
    return k


def _choose_tiles(B, N, itemsize, budget_bytes):
    """Pick (tb, tn) so that _BUFS * tb * tn * itemsize <= budget_bytes.

    Priority: full lane width (tn = N, one contiguous slab per row per DMA),
    tile the batch axis; only tile N if even an 8-row full-width block does not
    fit.  tb is a multiple of 8 (or the full B), tn a multiple of 128 (or the
    full N).  When B is large enough, tb is shrunk to give >= _MIN_STEPS grid
    steps so both v7x TensorCores pipeline."""
    n_pad = pl.cdiv(N, 128) * 128
    b_pad = pl.cdiv(B, 8) * 8

    if _BUFS * 8 * n_pad * itemsize <= budget_bytes:
        # Full lane width fits even for an 8-row block: tile the batch axis only.
        tn = N
        max_tb = (budget_bytes // (_BUFS * n_pad * itemsize)) // 8 * 8
        tb = max(8, min(b_pad, max_tb))
        if b_pad // 8 >= _MIN_STEPS:
            # Enough rows to hand out >= _MIN_STEPS blocks of >= 8 sublanes each.
            tb = min(tb, pl.cdiv(pl.cdiv(B, _MIN_STEPS), 8) * 8)
        if tb >= b_pad:
            tb = B          # single block along batch: use exact (ragged) extent
    else:
        # N too wide even for an 8-row full-width block: tile both axes.
        tb = B if b_pad <= 8 else 8
        tb_pad = pl.cdiv(tb, 8) * 8
        max_tn = (budget_bytes // (_BUFS * tb_pad * itemsize)) // 128 * 128
        tn = max(128, min(n_pad, max_tn))
        if tn >= n_pad:
            tn = N
    return tb, tn


def _poisson_pallas(u_dus, *, budget_bytes=_DEFAULT_BUDGET):
    D, B, N = u_dus.shape
    assert D == 6, "Poisson expects u and 5 derivatives (6 rows)"
    dtype = u_dus.dtype
    itemsize = jnp.dtype(dtype).itemsize

    # Sublane packing for small B: contiguous per-row reshape, no data movement.
    k = _sublane_pack_factor(B, N, itemsize)
    if k > 1:
        Bp, Np = B * k, N // k
        x = u_dus.reshape(6, Bp, Np)
    else:
        Bp, Np = B, N
        x = u_dus

    tb, tn = _choose_tiles(Bp, Np, itemsize, budget_bytes)
    grid = (pl.cdiv(Bp, tb), pl.cdiv(Np, tn))

    def row_spec(row):
        # (None, tb, tn): squeeze the derivative axis, DMA only the chosen row.
        return pl.BlockSpec((None, tb, tn), lambda i, j, row=row: (row, i, j))

    out = pl.pallas_call(
        _poisson_kernel,
        out_shape=jax.ShapeDtypeStruct((Bp, Np), dtype),
        grid=grid,
        in_specs=[row_spec(_ROW_U), row_spec(_ROW_D2X), row_spec(_ROW_D2Y)],
        out_specs=pl.BlockSpec((tb, tn), lambda i, j: (i, j)),
        compiler_params=pltpu.CompilerParams(
            dimension_semantics=("parallel", "parallel")),
    )(x, x, x)   # same buffer 3x; each spec DMAs only its own row

    return out.reshape(B, N) if k > 1 else out


def poisson_forward_ref(u_dus, Xs=None):
    u, dudx, dudy = u_dus[0], u_dus[1], u_dus[2]
    d2udx2, d2udxdy, d2udy2 = u_dus[3], u_dus[4], u_dus[5]
    return d2udy2 + d2udx2 + 0.0 * dudx + 0.0 * dudy - 5.0 * u + 5.0


def poisson_forward(u_dus, Xs=None, aux_input=None, *, force_pallas=False):
    """u_dus: (6, BS, N_vector). Returns residual of shape (BS, N_vector).
    The Poisson module has no learnable parameters; Xs is unused."""
    D, B, N = u_dus.shape
    assert D == 6, "Poisson expects u and 5 derivatives (6 rows)"
    bytes_moved = 4 * B * N * jnp.dtype(u_dus.dtype).itemsize  # 3 loads + 1 store
    if not force_pallas and bytes_moved < _BYPASS_BYTES:
        # Tiny problem: pallas_call/DMA setup overhead dominates; let XLA fuse.
        return poisson_forward_ref(u_dus, Xs)
    return _poisson_pallas(u_dus)


if __name__ == "__main__":
    key = jax.random.PRNGKey(0)
    k1, k2, k3, k4, k5 = jax.random.split(key, 5)

    # Case 1: B == 8, lane-aligned N; force the Pallas path so the kernel runs.
    BS, NVEC = 8, 256
    u_dus = jax.random.normal(k1, (6, BS, NVEC), dtype=jnp.float32)
    Xs = jax.random.normal(k2, (BS, 2), dtype=jnp.float32)  # unused by Poisson
    out = jax.block_until_ready(poisson_forward(u_dus, Xs, force_pallas=True))
    assert out.shape == (BS, NVEC)
    assert jnp.allclose(out, poisson_forward_ref(u_dus, Xs), atol=1e-6, rtol=1e-6)

    # Case 2: small B with ragged N -> exercises sublane packing (4,200)->(8,100)
    # plus the masked lane tail.
    u_dus2 = jax.random.normal(k3, (6, 4, 200), dtype=jnp.float32)
    out2 = jax.block_until_ready(poisson_forward(u_dus2, force_pallas=True))
    assert out2.shape == (4, 200)
    assert jnp.allclose(out2, poisson_forward_ref(u_dus2), atol=1e-6, rtol=1e-6)

    # Case 3: tiny per-step budget forces the 2-D (batch x lane) grid with a
    # ragged batch tail, exercising the multi-step tiling path at small shapes.
    u_dus3 = jax.random.normal(k4, (6, 24, 512), dtype=jnp.float32)
    out3 = jax.block_until_ready(_poisson_pallas(u_dus3, budget_bytes=64 * 1024))
    assert out3.shape == (24, 512)
    assert jnp.allclose(out3, poisson_forward_ref(u_dus3), atol=1e-6, rtol=1e-6)

    # Case 4: bf16 with small B -> 16-deep sublane packing (4,256)->(16,64).
    u_dus4 = jax.random.normal(k5, (6, 4, 256), dtype=jnp.float32).astype(jnp.bfloat16)
    out4 = jax.block_until_ready(poisson_forward(u_dus4, force_pallas=True))
    assert out4.shape == (4, 256)
    assert jnp.allclose(out4.astype(jnp.float32),
                        poisson_forward_ref(u_dus4).astype(jnp.float32),
                        atol=2e-2, rtol=2e-2)

    print("KERNEL_OK")
</pallas_src>

<mosaic_0001>
module attributes {stable_mosaic.version = 11 : i64} {
  func.func @_poisson_kernel(%arg0: i32, %arg1: i32, %arg2: memref<1x8x256xf32, #tpu.memory_space<vmem>>, %arg3: memref<1x8x256xf32, #tpu.memory_space<vmem>>, %arg4: memref<1x8x256xf32, #tpu.memory_space<vmem>>, %arg5: memref<8x256xf32, #tpu.memory_space<vmem>>) attributes {dimension_semantics = [#tpu.dimension_semantics<parallel>, #tpu.dimension_semantics<parallel>], iteration_bounds = array<i64: 1, 1>, scalar_prefetch = 0 : i64, scratch_operands = 0 : i64, tpu.core_type = #tpu.core_type<tc>, window_params = [{transform_indices = @transform_0, window_bounds = array<i64: 1, 8, 256>}, {transform_indices = @transform_1, window_bounds = array<i64: 1, 8, 256>}, {transform_indices = @transform_2, window_bounds = array<i64: 1, 8, 256>}, {transform_indices = @transform_3, window_bounds = array<i64: 8, 256>}]} {
    %c0 = arith.constant 0 : index
    %c0_0 = arith.constant 0 : index
    %c0_1 = arith.constant 0 : index
    %0 = vector.load %arg4[%c0, %c0_0, %c0_1] : memref<1x8x256xf32, #tpu.memory_space<vmem>>, vector<1x8x256xf32>
    %1 = vector.shape_cast %0 : vector<1x8x256xf32> to vector<8x256xf32>
    %c0_2 = arith.constant 0 : index
    %c0_3 = arith.constant 0 : index
    %c0_4 = arith.constant 0 : index
    %2 = vector.load %arg3[%c0_2, %c0_3, %c0_4] : memref<1x8x256xf32, #tpu.memory_space<vmem>>, vector<1x8x256xf32>
    %3 = vector.shape_cast %2 : vector<1x8x256xf32> to vector<8x256xf32>
    %4 = arith.addf %1, %3 : vector<8x256xf32>
    %c0_5 = arith.constant 0 : index
    %c0_6 = arith.constant 0 : index
    %c0_7 = arith.constant 0 : index
    %5 = vector.load %arg2[%c0_5, %c0_6, %c0_7] : memref<1x8x256xf32, #tpu.memory_space<vmem>>, vector<1x8x256xf32>
    %6 = vector.shape_cast %5 : vector<1x8x256xf32> to vector<8x256xf32>
    %cst = arith.constant 5.000000e+00 : f32
    %7 = vector.broadcast %cst : f32 to vector<8x256xf32>
    %8 = arith.mulf %7, %6 : vector<8x256xf32>
    %9 = arith.subf %4, %8 : vector<8x256xf32>
    %cst_8 = arith.constant 5.000000e+00 : f32
    %10 = vector.broadcast %cst_8 : f32 to vector<8x256xf32>
    %11 = arith.addf %9, %10 : vector<8x256xf32>
    %c0_9 = arith.constant 0 : index
    %c0_10 = arith.constant 0 : index
    %12 = vector.load %arg5[%c0_9, %c0_10] : memref<8x256xf32, #tpu.memory_space<vmem>>, vector<8x256xf32>
    tpu.vector_store %arg5[%c0_9, %c0_10], %11 {strides = array<i32>} : memref<8x256xf32, #tpu.memory_space<vmem>>, vector<8x256xf32>,
    return
  }
  func.func @transform_0(%arg0: i32, %arg1: i32) -> (i32, i32, i32) {
    %c0_i32 = arith.constant 0 : i32
    %c0_i32_0 = arith.constant 0 : i32
    return %c0_i32, %arg0, %arg1 : i32, i32, i32
  }
  func.func @transform_1(%arg0: i32, %arg1: i32) -> (i32, i32, i32) {
    %c3_i32 = arith.constant 3 : i32
    %c0_i32 = arith.constant 0 : i32
    return %c3_i32, %arg0, %arg1 : i32, i32, i32
  }
  func.func @transform_2(%arg0: i32, %arg1: i32) -> (i32, i32, i32) {
    %c5_i32 = arith.constant 5 : i32
    %c0_i32 = arith.constant 0 : i32
    return %c5_i32, %arg0, %arg1 : i32, i32, i32
  }
  func.func @transform_3(%arg0: i32, %arg1: i32) -> (i32, i32) {
    %c0_i32 = arith.constant 0 : i32
    return %arg0, %arg1 : i32, i32
  }
}

</mosaic_0001>

<bundles_post_ra>
// kernel: tpu_custom_call.1
= control target key start
LH: loop header
LB: loop body
LE: loop exit
PB: predicated region body
PF: predicated region fallthrough
CT: control target
= control target key end

     0   :  { %8 = vsyncpa [#allocation3], 0  ;;  %s260_s0 = inlined_call_operand.hbm [shape: f32[6,8,256], index: 0, kind: input, shape index: {}]   ;;  %s261_s1 = inlined_call_operand.hbm [shape: f32[6,8,256], index: 1, kind: input, shape index: {}]   ;;  %s262_s2 = inlined_call_operand.hbm [shape: f32[6,8,256], index: 2, kind: input, shape index: {}]   ;;  %s263_s3 = inlined_call_operand.hbm [shape: f32[8,256], index: 3, kind: output, shape index: {}]  }
   0x1   :  { %9 = vsyncpa [#allocation6], 0  ;;  %s26_s14 = scalar_lea.hbm %s261_s1, 768 }
   0x2   :  { %10 = vsyncpa [#allocation4], 0  ;;  %s188_s15 = smov [#allocation5]   ;;  %s189_s17 = smov [#allocation2]  }
   0x3   :  { %s28_s16 = sshll.u32 %s188_s15, 4  ;;  %s17_s18 = sshll.u32 %s189_s17, 4  ;;  %s29_s16 = int_to_ptr.vmem [resolvable:$true] %s28_s16  ;;  %s18_s18 = int_to_ptr.vmem [resolvable:$true] %s17_s18 }
   0x4   :  { %s112_s21 = scalar_lea.hbm %s261_s1, 1024  ;;  %s90_s24 = scalar_lea.hbm %s261_s1, 1536 }
   0x5   :  { %p89_p0 = scmp.ne.s32.totalorder %s26_s14, %s112_s21  ;;  %p91_p1 = scmp.lt.u32.totalorder %s26_s14, %s261_s1 }
   0x6   :  { %p92_p2 = scmp.lt.u32.totalorder %s90_s24, %s112_s21  ;;  %p94_p4 = scmp.lt.u32.totalorder %s112_s21, %s26_s14 }
   0x8   :  { %p93_p3 = por %p92_p2, %p91_p1 }
   0xa   :  { %p95_p5 = por %p94_p4, %p93_p3 }
   0xc   :  { %p96_p6 = pnand %p95_p5, %p89_p0 }
   0xe   :  { %99 = shalt.err (!%p96_p6)
}
   0xf   :  { %s100_s27 = scalar_lea.vmem %s29_s16, 256  ;;  %p105_p8 = scmp.lt.s32.totalorder %s29_s16, %s29_s16 }
  0x10   :  { %p101_p7 = scmp.ne.s32.totalorder %s29_s16, %s100_s27  ;;  %p106_p9 = scmp.lt.s32.totalorder %s100_s27, %s100_s27 }
  0x12   :  { %p107_p10 = por %p106_p9, %p105_p8 }
  0x14   :  { %p108_p11 = pnand %p107_p10, %p101_p7 }
  0x16   :  { %111 = shalt.err (!%p108_p11)
}
  0x17   :  { %31 = dma.hbm_to_vmem [thread:$0]  %s26_s14, 256, %s29_s16, [#allocation6]  }
  0x18   :  { %s113_s30 = scalar_lea.hbm %s260_s0, 256  ;;  %s115_s7 = scalar_lea.hbm %s260_s0, 1536 }
  0x19   :  { %p114_p12 = scmp.ne.s32.totalorder %s260_s0, %s113_s30  ;;  %p116_p13 = scmp.lt.u32.totalorder %s115_s7, %s113_s30 }
  0x1a   :  { %p117_p0 = scmp.lt.u32.totalorder %s113_s30, %s260_s0 }
  0x1c   :  { %p118_p1 = por %p117_p0, %p116_p13 }
  0x1e   :  { %p119_p2 = pnand %p118_p1, %p114_p12 }
  0x20   :  { %122 = shalt.err (!%p119_p2)
}
  0x21   :  { %s123_s10 = scalar_lea.vmem %s18_s18, 256  ;;  %p128_p4 = scmp.lt.s32.totalorder %s18_s18, %s18_s18 }
  0x22   :  { %p124_p3 = scmp.ne.s32.totalorder %s18_s18, %s123_s10  ;;  %p129_p5 = scmp.lt.s32.totalorder %s123_s10, %s123_s10 }
  0x24   :  { %p130_p6 = por %p129_p5, %p128_p4 }
  0x26   :  { %p131_p7 = pnand %p130_p6, %p124_p3 }
  0x28   :  { %134 = shalt.err (!%p131_p7)
}
  0x29   :  { %20 = dma.hbm_to_vmem [thread:$0]  %s260_s0, 256, %s18_s18, [#allocation3]  }
  0x2a   :  { %s37_s15 = scalar_lea.hbm %s262_s2, 1280  ;;  %s190_s16 = smov [#allocation7]  }
  0x2b   :  { %s39_s17 = sshll.u32 %s190_s16, 4  ;;  %s159_s21 = scalar_lea.hbm %s262_s2, 1536  ;;  %s40_s17 = int_to_ptr.vmem [resolvable:$true] %s39_s17 }
  0x2c   :  { %p136_p8 = scmp.ne.s32.totalorder %s37_s15, %s159_s21  ;;  %p138_p9 = scmp.lt.u32.totalorder %s37_s15, %s262_s2 }
  0x2d   :  { %p139_p10 = scmp.lt.u32.totalorder %s159_s21, %s159_s21  ;;  %p141_p12 = scmp.lt.u32.totalorder %s159_s21, %s37_s15 }
  0x2f   :  { %p140_p11 = por %p139_p10, %p138_p9 }
  0x31   :  { %p142_p13 = por %p141_p12, %p140_p11 }
  0x33   :  { %p143_p0 = pnand %p142_p13, %p136_p8 }
  0x35   :  { %146 = shalt.err (!%p143_p0)
}
  0x36   :  { %s147_s0 = scalar_lea.vmem %s40_s17, 256  ;;  %p152_p2 = scmp.lt.s32.totalorder %s40_s17, %s40_s17 }
  0x37   :  { %p148_p1 = scmp.ne.s32.totalorder %s40_s17, %s147_s0  ;;  %p153_p3 = scmp.lt.s32.totalorder %s147_s0, %s147_s0 }
  0x39   :  { %p154_p4 = por %p153_p3, %p152_p2 }
  0x3b   :  { %p155_p5 = pnand %p154_p4, %p148_p1 }
  0x3d   :  { %158 = shalt.err (!%p155_p5)
}
  0x3e   :  { %42 = dma.hbm_to_vmem [thread:$0]  %s37_s15, 256, %s40_s17, [#allocation6]  }
  0x3f   :  { %182 = dma.done.wait [#allocation3], 256  }
  0x40   :  { %183 = vsyncadd [#allocation3], 4294967040 }
  0x41   :  { %184 = dma.done.wait [#allocation6], 512  }
  0x42   :  { %185 = vsyncadd [#allocation6], 4294966784  ;;  %v52_v0 = vld [vmem:[#allocation7] sm:$0xff]  ;;  %v54_v1 = vld [vmem:[#allocation5] sm:$0xff]  ;;  %s191_s2 = smov [#allocation8]  }
  0x43   :  { %v58_v2 = vld [vmem:[#allocation2] sm:$0xff]  ;;  %v56_v3 = vadd.f32 %v54_v1, %v52_v0  ;;  %v53_v5 = vld [vmem:[#allocation7 + $0x8] sm:$0xff]  ;;  %v55_v6 = vld [vmem:[#allocation5 + $0x8] sm:$0xff]  ;;  %s74_s18 = sshll.u32 %s191_s2, 4  ;;  %s75_s18 = int_to_ptr.vmem [resolvable:$true] %s74_s18 }
  0x44   :  { %v60_v4 = vmul.f32 5.0, %v58_v2  ;;  %v59_v7 = vld [vmem:[#allocation2 + $0x8] sm:$0xff]  ;;  %v57_v8 = vadd.f32 %v55_v6, %v53_v5  ;;  %s160_s24 = scalar_lea.vmem %s75_s18, 256  ;;  %p165_p7 = scmp.lt.s32.totalorder %s75_s18, %s75_s18 }
  0x45   :  { %v61_v9 = vmul.f32 5.0, %v59_v7  ;;  %p161_p6 = scmp.ne.s32.totalorder %s75_s18, %s160_s24  ;;  %p166_p8 = scmp.lt.s32.totalorder %s160_s24, %s160_s24 }
  0x46   :  { %v62_v10 = vsub.f32 %v56_v3, %v60_v4 }
  0x47   :  { %v63_v11 = vsub.f32 %v57_v8, %v61_v9  ;;  %p167_p9 = por %p166_p8, %p165_p7 }
  0x48   :  { %v64_v12 = vadd.f32 5.0, %v62_v10 }
  0x49   :  { %v65_v13 = vadd.f32 5.0, %v63_v11  ;;  %p168_p10 = pnand %p167_p9, %p161_p6 }
  0x4a   :  { %66 = vst [vmem:[#allocation8] sm:$0xff] %v64_v12 }
  0x4b   :  { %67 = vst [vmem:[#allocation8 + $0x8] sm:$0xff] %v65_v13 }
  0x4c   :  { %171 = shalt.err (!%p168_p10)
}
  0x4d   :  { %s172_s27 = scalar_lea.hbm %s263_s3, 256 }
  0x4e   :  { %p173_p11 = scmp.ne.s32.totalorder %s263_s3, %s172_s27  ;;  %p176_p12 = scmp.lt.u32.totalorder %s172_s27, %s263_s3 }
  0x50   :  { %p178_p13 = pnand %p176_p12, %p173_p11 }
  0x52   :  { %181 = shalt.err (!%p178_p13)
}
  0x53   :  { %77 = dma.vmem_to_hbm [thread:$0]  %s75_s18, 256, %s263_s3, [#allocation4]  }
  0x54   :  { %186 = dma.done.wait [#allocation4], 256  }
  0x55   :  { %187 = vsyncadd [#allocation4], 4294967040 }
  0x56   :  { %81 = vsyncpa [#allocation3], 1 }
  0x57   :  { %82 = vsyncpa [#allocation6], 1 }
  0x58   :  { %83 = vsyncpa [#allocation4], 1 }

</bundles_post_ra>
